<compile_context>
chip_gen: v7x
topology: tpu7x:2x2x1
jax: 0.10.0
libtpu: 0.0.40
codegen_flags: <defaults>
</compile_context>

<pallas_src>
import functools
import math

import jax
import jax.numpy as jnp
from jax import lax
from jax.experimental import pallas as pl
from jax.experimental.pallas import tpu as pltpu


def _round_up(x: int, m: int) -> int:
    return ((x + m - 1) // m) * m


def _gather_block_kernel(idx_ref, pe_hbm, out_ref, pe_vmem, *,
                         pack, d_model, max_len, table_chunk):
    """Gather one lane-dense output block from the resident pe table.

    idx_ref : VMEM (rows, pack) int32      -- this block's indices (pack per row)
    pe_hbm  : ANY  (max_len, d_model)      -- whole table, raw HBM ref
    out_ref : VMEM (rows, pack*d_model)    -- lane-dense output tile
    pe_vmem : VMEM (max_len, d_model)      -- single resident copy of the table
    """
    # Copy the table HBM -> VMEM exactly once.  The grid axis is "arbitrary"
    # (sequential on one core), so step 0 always runs first and the scratch
    # persists across the remaining grid steps.
    @pl.when(pl.program_id(0) == 0)
    def _():
        pltpu.sync_copy(pe_hbm, pe_vmem)

    rows = out_ref.shape[0]
    parts = []
    for j in range(pack):                           # static unroll over pack slots
        idx_j = idx_ref[:, j:j + 1]                 # (rows, 1) int32
        acc = jnp.zeros((rows, d_model), jnp.float32)
        for c0 in range(0, max_len, table_chunk):   # static chunking of the table
            c1 = min(c0 + table_chunk, max_len)
            tab = pe_vmem[c0:c1, :].astype(jnp.float32)
            col = lax.broadcasted_iota(jnp.int32, (rows, c1 - c0), 1) + c0
            onehot = (col == idx_j).astype(jnp.float32)
            # Exact gather: weights are exactly 0/1, accumulation in f32, and
            # HIGHEST precision keeps the table values un-truncated on the MXU.
            acc = acc + lax.dot_general(
                onehot, tab, (((1,), (0,)), ((), ())),
                precision=lax.Precision.HIGHEST,
                preferred_element_type=jnp.float32)
        parts.append(acc)

    val = parts[0] if pack == 1 else jnp.concatenate(parts, axis=-1)
    out_ref[...] = val.astype(out_ref.dtype)


def make_pe(d_model: int, max_len: int = 5000, frequency: float = 10000.0,
            amplitude: float = 1.0) -> jnp.ndarray:
    """Deterministic buffer setup, mirrors TimeEmbedding.__init__ (plain JAX glue)."""
    position = jnp.arange(max_len, dtype=jnp.float32)[:, None]
    div_term = jnp.exp(
        jnp.arange(0, d_model, 2, dtype=jnp.float32) * (-math.log(frequency) / d_model)
    )
    pe = jnp.zeros((max_len, d_model), dtype=jnp.float32)
    pe = pe.at[:, 0::2].set(amplitude * jnp.sin(position * div_term))
    pe = pe.at[:, 1::2].set(amplitude * jnp.cos(position * div_term))
    return pe


def time_embedding(pe: jnp.ndarray, time: jnp.ndarray, *, block_rows: int | None = None
                   ) -> jnp.ndarray:
    """Pallas implementation of TimeEmbedding.forward: returns pe[time]."""
    orig_shape = time.shape
    max_len, d_model = pe.shape
    itemsize = jnp.dtype(pe.dtype).itemsize

    t = time.reshape(-1).astype(jnp.int32)
    # PyTorch-style negative indexing, then clamp: the in-kernel gather is not
    # bounds-checked at runtime, so an OOB index must never reach it.
    # TODO(synk): PyTorch raises on fully out-of-range indices; we clamp instead.
    t = jnp.where(t < 0, t + max_len, t)
    t = jnp.clip(t, 0, max_len - 1)

    n = t.shape[0]
    if n == 0:
        return jnp.zeros(orig_shape + (d_model,), pe.dtype)

    # Tiny batches: the resident-table kernel streams the whole pe array from
    # HBM regardless of n, so for n << max_len a plain XLA gather is cheaper.
    if block_rows is None and n * 4 < max_len:
        return jnp.take(pe, t, axis=0).reshape(orig_shape + (d_model,))

    # Lane-dense packing: place `pack` gathered rows side by side so the output
    # tile's last dim is a full 128 lanes when d_model is small.
    if d_model < 128 and 128 % d_model == 0:
        pack = 128 // d_model
    else:
        pack = 1
    row_align = 8 * pack

    if block_rows is None:
        # Bigger blocks for small d_model: target ~512 KB output tiles.
        cap = max(row_align, (1 << 19) // (d_model * itemsize))
        block_rows = min(_round_up(n, row_align), _round_up(cap, row_align))
    block_rows = max(row_align, _round_up(int(block_rows), row_align))

    n_blocks = pl.cdiv(n, block_rows)
    n_pad = n_blocks * block_rows
    if n_pad != n:
        t = jnp.pad(t, (0, n_pad - n))   # padded rows gather row 0; sliced off below

    idx = t.reshape(n_pad // pack, pack)
    rows = block_rows // pack
    packed_cols = pack * d_model
    table_chunk = min(max_len, 512)

    # VMEM budget: ONE copy of the table + double-buffered output/index tiles +
    # one-hot working set, capped at device capacity (64 MiB on v7x).
    pe_bytes = max_len * d_model * itemsize
    out_tile_bytes = rows * packed_cols * itemsize
    idx_tile_bytes = rows * pack * 4
    onehot_ws = rows * table_chunk * 4 + rows * d_model * 4
    need = pe_bytes + 2 * (out_tile_bytes + idx_tile_bytes) + 2 * onehot_ws + (8 << 20)
    try:
        cap_bytes = int(pltpu.get_tpu_info().vmem_capacity_bytes)
    except Exception:
        cap_bytes = 64 << 20   # conservative cap, valid on all generations
    vmem_limit = int(max(16 << 20, min(need, cap_bytes - (1 << 20))))

    cost = pl.CostEstimate(
        flops=2 * n_pad * max_len * d_model,
        transcendentals=0,
        bytes_accessed=pe_bytes + n_pad * d_model * itemsize + n_pad * 4,
    )

    kernel = functools.partial(
        _gather_block_kernel, pack=pack, d_model=d_model, max_len=max_len,
        table_chunk=table_chunk)

    out = pl.pallas_call(
        kernel,
        out_shape=jax.ShapeDtypeStruct((n_pad // pack, packed_cols), pe.dtype),
        grid_spec=pltpu.PrefetchScalarGridSpec(
            num_scalar_prefetch=0,
            grid=(n_blocks,),
            in_specs=[
                pl.BlockSpec((rows, pack), lambda i: (i, 0)),   # block's indices (VMEM)
                pl.BlockSpec(memory_space=pl.ANY),              # pe stays in HBM
            ],
            out_specs=pl.BlockSpec((rows, packed_cols), lambda i: (i, 0)),
            scratch_shapes=[pltpu.VMEM((max_len, d_model), pe.dtype)],
        ),
        compiler_params=pltpu.CompilerParams(
            # "arbitrary": sequential grid -> the step-0 table load is valid and
            # the table is read from HBM exactly once (even on dual-TC v7x).
            dimension_semantics=("arbitrary",),
            vmem_limit_bytes=vmem_limit,
        ),
        cost_estimate=cost,
    )(idx, pe)

    out = out.reshape(n_pad, d_model)
    if n_pad != n:
        out = out[:n]
    return out.reshape(orig_shape + (d_model,))


if __name__ == "__main__":
    key = jax.random.PRNGKey(0)
    d_model, max_len = 32, 64
    pe = make_pe(d_model=d_model, max_len=max_len, frequency=10000.0, amplitude=1.0)
    k1, k2, k3, k4 = jax.random.split(key, 4)

    # Case 1: 128 indices with forced block_rows=32 -> 4 grid steps (exercises the
    # load-table-once-at-step-0 path and multi-step output pipelining).
    t1 = jax.random.randint(k1, (128,), minval=0, maxval=max_len, dtype=jnp.int32)
    out1 = jax.block_until_ready(time_embedding(pe, t1, block_rows=32))
    assert out1.shape == (128, d_model) and out1.dtype == jnp.float32
    assert jnp.allclose(out1, pe[t1], atol=1e-6, rtol=1e-6), "mismatch (case 1)"

    # Case 2: 2-D time with negative indices and flat size not a multiple of the
    # block (padding + trailing-slice + reshape path, lane-dense packing k=4).
    t2 = jax.random.randint(k2, (3, 7), minval=-max_len, maxval=max_len, dtype=jnp.int32)
    out2 = jax.block_until_ready(time_embedding(pe, t2))
    assert out2.shape == (3, 7, d_model)
    assert jnp.allclose(out2, pe[t2], atol=1e-6, rtol=1e-6), "mismatch (case 2)"

    # Case 3: tiny batch -> wrapper dispatches to the plain XLA gather fallback.
    t3 = jax.random.randint(k3, (2,), minval=0, maxval=max_len, dtype=jnp.int32)
    out3 = jax.block_until_ready(time_embedding(pe, t3))
    assert jnp.allclose(out3, pe[t3], atol=1e-6, rtol=1e-6), "mismatch (case 3)"

    # Case 4: d_model=128 -> output already lane-dense, pack factor 1.
    pe128 = make_pe(d_model=128, max_len=max_len)
    t4 = jax.random.randint(k4, (40,), minval=0, maxval=max_len, dtype=jnp.int32)
    out4 = jax.block_until_ready(time_embedding(pe128, t4))
    assert out4.shape == (40, 128)
    assert jnp.allclose(out4, pe128[t4], atol=1e-6, rtol=1e-6), "mismatch (case 4)"

    print("KERNEL_OK")
</pallas_src>

<mosaic_0001>
module attributes {stable_mosaic.version = 11 : i64} {
  func.func @_gather_block_kernel(%arg0: i32, %arg1: memref<8x4xi32, #tpu.memory_space<vmem>>, %arg2: memref<64x32xf32, #tpu.memory_space<any>>, %arg3: memref<8x128xf32, #tpu.memory_space<vmem>>, %arg4: memref<64x32xf32, #tpu.memory_space<vmem>>) attributes {dimension_semantics = [#tpu.dimension_semantics<arbitrary>], iteration_bounds = array<i64: 4>, scalar_prefetch = 0 : i64, scratch_operands = 1 : i64, tpu.core_type = #tpu.core_type<tc>, window_params = [{transform_indices = @transform_0, window_bounds = array<i64: 8, 4>}, {}, {transform_indices = @transform_2, window_bounds = array<i64: 8, 128>}]} {
    %c0_i32 = arith.constant 0 : i32
    %0 = arith.cmpi eq, %arg0, %c0_i32 : i32
    %1 = arith.extui %0 : i1 to i32
    %c0_i32_0 = arith.constant 0 : i32
    %2 = arith.cmpi ne, %1, %c0_i32_0 : i32
    scf.if %2 {
      "tpu.region"() ({
        %53 = tpu.sem_alloc : memref<!tpu.dma_semaphore, #tpu.memory_space<semaphore_mem>>
        tpu.enqueue_dma source(%arg2 : memref<64x32xf32, #tpu.memory_space<any>>) target(%arg4 : memref<64x32xf32, #tpu.memory_space<vmem>>) target_semaphore(%53 : memref<!tpu.dma_semaphore, #tpu.memory_space<semaphore_mem>>)
        tpu.wait_dma2 semaphore(%53 : memref<!tpu.dma_semaphore, #tpu.memory_space<semaphore_mem>>) src(%arg2 : memref<64x32xf32, #tpu.memory_space<any>>) dst(%arg4 : memref<64x32xf32, #tpu.memory_space<vmem>>)
        tpu.yield
      }) : () -> ()
    } else {
    }
    %c0 = arith.constant 0 : index
    %c0_1 = arith.constant 0 : index
    %3 = vector.load %arg1[%c0, %c0_1] : memref<8x4xi32, #tpu.memory_space<vmem>>, vector<8x1xi32>
    %cst = arith.constant 0.000000e+00 : f32
    %4 = vector.broadcast %cst : f32 to vector<8x32xf32>
    %c0_2 = arith.constant 0 : index
    %c0_3 = arith.constant 0 : index
    %5 = vector.load %arg4[%c0_2, %c0_3] : memref<64x32xf32, #tpu.memory_space<vmem>>, vector<64x32xf32>
    %6 = tpu.iota {dimensions = array<i32: 1>} : vector<8x64xi32>
    %c0_i32_4 = arith.constant 0 : i32
    %7 = vector.broadcast %c0_i32_4 : i32 to vector<8x64xi32>
    %8 = arith.addi %6, %7 : vector<8x64xi32>
    %9 = vector.broadcast %3 : vector<8x1xi32> to vector<8x64xi32>
    %10 = arith.cmpi eq, %8, %9 : vector<8x64xi32>
    %11 = arith.extui %10 : vector<8x64xi1> to vector<8x64xi32>
    %12 = arith.sitofp %11 : vector<8x64xi32> to vector<8x64xf32>
    %cst_5 = arith.constant dense<0.000000e+00> : vector<8x32xf32>
    %13 = tpu.matmul %12, %5, %cst_5 {dimension_numbers = #tpu.dot_dimension_numbers<[1], [0], [0], [1], [0, 0, 1, 1], [], []>, precision = #tpu.contract_precision<fp32>} : vector<8x64xf32>, vector<64x32xf32>, vector<8x32xf32> -> vector<8x32xf32>
    %14 = arith.addf %4, %13 : vector<8x32xf32>
    %c0_6 = arith.constant 0 : index
    %c1 = arith.constant 1 : index
    %15 = vector.load %arg1[%c0_6, %c1] : memref<8x4xi32, #tpu.memory_space<vmem>>, vector<8x1xi32>
    %cst_7 = arith.constant 0.000000e+00 : f32
    %16 = vector.broadcast %cst_7 : f32 to vector<8x32xf32>
    %c0_8 = arith.constant 0 : index
    %c0_9 = arith.constant 0 : index
    %17 = vector.load %arg4[%c0_8, %c0_9] : memref<64x32xf32, #tpu.memory_space<vmem>>, vector<64x32xf32>
    %18 = tpu.iota {dimensions = array<i32: 1>} : vector<8x64xi32>
    %c0_i32_10 = arith.constant 0 : i32
    %19 = vector.broadcast %c0_i32_10 : i32 to vector<8x64xi32>
    %20 = arith.addi %18, %19 : vector<8x64xi32>
    %21 = vector.broadcast %15 : vector<8x1xi32> to vector<8x64xi32>
    %22 = arith.cmpi eq, %20, %21 : vector<8x64xi32>
    %23 = arith.extui %22 : vector<8x64xi1> to vector<8x64xi32>
    %24 = arith.sitofp %23 : vector<8x64xi32> to vector<8x64xf32>
    %cst_11 = arith.constant dense<0.000000e+00> : vector<8x32xf32>
    %25 = tpu.matmul %24, %17, %cst_11 {dimension_numbers = #tpu.dot_dimension_numbers<[1], [0], [0], [1], [0, 0, 1, 1], [], []>, precision = #tpu.contract_precision<fp32>} : vector<8x64xf32>, vector<64x32xf32>, vector<8x32xf32> -> vector<8x32xf32>
    %26 = arith.addf %16, %25 : vector<8x32xf32>
    %c0_12 = arith.constant 0 : index
    %c2 = arith.constant 2 : index
    %27 = vector.load %arg1[%c0_12, %c2] : memref<8x4xi32, #tpu.memory_space<vmem>>, vector<8x1xi32>
    %cst_13 = arith.constant 0.000000e+00 : f32
    %28 = vector.broadcast %cst_13 : f32 to vector<8x32xf32>
    %c0_14 = arith.constant 0 : index
    %c0_15 = arith.constant 0 : index
    %29 = vector.load %arg4[%c0_14, %c0_15] : memref<64x32xf32, #tpu.memory_space<vmem>>, vector<64x32xf32>
    %30 = tpu.iota {dimensions = array<i32: 1>} : vector<8x64xi32>
    %c0_i32_16 = arith.constant 0 : i32
    %31 = vector.broadcast %c0_i32_16 : i32 to vector<8x64xi32>
    %32 = arith.addi %30, %31 : vector<8x64xi32>
    %33 = vector.broadcast %27 : vector<8x1xi32> to vector<8x64xi32>
    %34 = arith.cmpi eq, %32, %33 : vector<8x64xi32>
    %35 = arith.extui %34 : vector<8x64xi1> to vector<8x64xi32>
    %36 = arith.sitofp %35 : vector<8x64xi32> to vector<8x64xf32>
    %cst_17 = arith.constant dense<0.000000e+00> : vector<8x32xf32>
    %37 = tpu.matmul %36, %29, %cst_17 {dimension_numbers = #tpu.dot_dimension_numbers<[1], [0], [0], [1], [0, 0, 1, 1], [], []>, precision = #tpu.contract_precision<fp32>} : vector<8x64xf32>, vector<64x32xf32>, vector<8x32xf32> -> vector<8x32xf32>
    %38 = arith.addf %28, %37 : vector<8x32xf32>
    %c0_18 = arith.constant 0 : index
    %c3 = arith.constant 3 : index
    %39 = vector.load %arg1[%c0_18, %c3] : memref<8x4xi32, #tpu.memory_space<vmem>>, vector<8x1xi32>
    %cst_19 = arith.constant 0.000000e+00 : f32
    %40 = vector.broadcast %cst_19 : f32 to vector<8x32xf32>
    %c0_20 = arith.constant 0 : index
    %c0_21 = arith.constant 0 : index
    %41 = vector.load %arg4[%c0_20, %c0_21] : memref<64x32xf32, #tpu.memory_space<vmem>>, vector<64x32xf32>
    %42 = tpu.iota {dimensions = array<i32: 1>} : vector<8x64xi32>
    %c0_i32_22 = arith.constant 0 : i32
    %43 = vector.broadcast %c0_i32_22 : i32 to vector<8x64xi32>
    %44 = arith.addi %42, %43 : vector<8x64xi32>
    %45 = vector.broadcast %39 : vector<8x1xi32> to vector<8x64xi32>
    %46 = arith.cmpi eq, %44, %45 : vector<8x64xi32>
    %47 = arith.extui %46 : vector<8x64xi1> to vector<8x64xi32>
    %48 = arith.sitofp %47 : vector<8x64xi32> to vector<8x64xf32>
    %cst_23 = arith.constant dense<0.000000e+00> : vector<8x32xf32>
    %49 = tpu.matmul %48, %41, %cst_23 {dimension_numbers = #tpu.dot_dimension_numbers<[1], [0], [0], [1], [0, 0, 1, 1], [], []>, precision = #tpu.contract_precision<fp32>} : vector<8x64xf32>, vector<64x32xf32>, vector<8x32xf32> -> vector<8x32xf32>
    %50 = arith.addf %40, %49 : vector<8x32xf32>
    %51 = tpu.concatenate %14, %26, %38, %50 in 1 : vector<8x32xf32>, vector<8x32xf32>, vector<8x32xf32>, vector<8x32xf32> -> vector<8x128xf32>
    %c0_24 = arith.constant 0 : index
    %c0_25 = arith.constant 0 : index
    %52 = vector.load %arg3[%c0_24, %c0_25] : memref<8x128xf32, #tpu.memory_space<vmem>>, vector<8x128xf32>
    tpu.vector_store %arg3[%c0_24, %c0_25], %51 {strides = array<i32>} : memref<8x128xf32, #tpu.memory_space<vmem>>, vector<8x128xf32>,
    return
  }
  func.func @transform_0(%arg0: i32) -> (i32, i32) {
    %c0_i32 = arith.constant 0 : i32
    %c0_i32_0 = arith.constant 0 : i32
    return %arg0, %c0_i32 : i32, i32
  }
  func.func @transform_2(%arg0: i32) -> (i32, i32) {
    %c0_i32 = arith.constant 0 : i32
    %c0_i32_0 = arith.constant 0 : i32
    return %arg0, %c0_i32 : i32, i32
  }
}

</mosaic_0001>

<bundles_post_ra>
// kernel: tpu_custom_call.1
= control target key start
LH: loop header
LB: loop body
LE: loop exit
PB: predicated region body
PF: predicated region fallthrough
CT: control target
= control target key end

     0   :  { %7 = vsyncpa [#allocation4], 0  ;;  %s4157_s0 = inlined_call_operand.vmem [shape: s32[32,4], index: 0, kind: input, shape index: {}]   ;;  %s4158_s1 = inlined_call_operand.vmem [shape: f32[64,32], index: 1, kind: input, shape index: {}]   ;;  %s4159_s2 = inlined_call_operand.hbm [shape: f32[32,128], index: 2, kind: output, shape index: {}]  }
   0x1   :  { %9 = vsyncpa [#allocation4 + $0x1], 0  ;;  %s3644_s9 = smov 0   ;;  %s3646_s10 = smov 0  }
   0x2   :  { %s3648_s11 = smov 0   ;;  %s3650_s12 = smov 0  }
   0x3 LB: > { %s3665_s13 = sadd.s32 4294967295, %s3616_s12   ;;  %s2471_s14 = sadd.s32 4294967294, %s3616_s12   ;;  %s3616_s12 = sphi %s3650_s12, %s4165_s12   ;;  %s3612_s11 = sphi %s3648_s11, %s4164_s11   ;;  %s3608_s10 = sphi %s3646_s10, %s4163_s10   ;;  %s3604_s9 = sphi %s3644_s9, %s4162_s9  }
   0x4   : > { %s3669_s15 = sadd.s32 1, %s3616_s12   ;;  %s48_s16 = sadd.s32 1, %s3612_s11 }
   0x5   : > { %s45_s17 = ssub.s32 %s3616_s12, %s3669_s15  ;;  %p58_p0 = scmp.ne.s32.totalorder %s3612_s11, %s3608_s10 }
   0x6   : > { %p46_p1 = scmp.eq.s32.totalorder %s45_s17, 0  ;;  %p59_p2 = scmp.eq.s32.totalorder %s3665_s13, 3 }
   0x7   : > { %p64_p3 = scmp.ne.s32.totalorder %s3608_s10, %s3604_s9  ;;  %p65_p4 = scmp.eq.s32.totalorder %s2471_s14, 3 }
   0x8   : > { %s3680_s18 = scalar_select %p46_p1, %s3612_s11, %s48_s16  }
   0x9   : > { %p3682_p5 = por %p59_p2, %p58_p0  ;;  %p3686_p6 = por %p65_p4, %p64_p3 }
   0xa   : > { %p2474_p7 = scmp.ge.s32.totalorder %s3616_s12, 1  ;;  %p90_p8 = scmp.lt.s32.totalorder %s3616_s12, 5 }
   0xc   : > { %p91_p9 = pnand %p2474_p7, %p90_p8 }
   0xd   : > { %s106_s21 = sand.u32 (!%p91_p9), 1, %s3608_s10   ;;  %p109_p10 = scmp.lt.s32.totalorder (!%p91_p9), %s3665_s13, 3 }
   0xe   : > { %94 = sbr.rel (%p91_p9) target bundleno = 701 (0x2bd), region = 24  ;;  %s3696_s22 = sshll.u32 (!%p91_p9), %s106_s21, 3 }
   0xf   : > { %s108_s28 = scalar_lea.vmem (!%p91_p9), [#allocation3], %s3696_s22  ;;  %p2477_p11 = scmp.ne.s32.totalorder (!%p91_p9), %s3665_s13, 0 }
  0x15   : > { %s110_s23 = scalar_select %p109_p10, %s3665_s13, 3 }
  0x16   : > { %116 = sbr.rel (%p2477_p11) target bundleno = 37 (0x25), region = 28 }
  0x17   : > { %s2476_s24 = sshll.u32 %s110_s23, 3 }
  0x18   : > { %s112_s27 = scalar_lea.vmem %s4157_s0, %s2476_s24 }
  0x1d   : > { %v149_v0 = vld [vmem:[%s4158_s1] sm:$0xff]  ;;  %v151_v1 = vld [vmem:[%s4158_s1 + $0x8] sm:$0xff]  ;;  %v153_v2 = vld [vmem:[%s4158_s1 + $0x10] sm:$0xff] }
  0x1e   : > { %150 = vst [vmem:[#allocation2] sm:$0xff] %v149_v0  ;;  %152 = vst [vmem:[#allocation2 + $0x8] sm:$0xff] %v151_v1  ;;  %v155_v3 = vld [vmem:[%s4158_s1 + $0x18] sm:$0xff]  ;;  %v157_v4 = vld [vmem:[%s4158_s1 + $0x20] sm:$0xff] }
  0x1f   : > { %154 = vst [vmem:[#allocation2 + $0x10] sm:$0xff] %v153_v2  ;;  %v159_v5 = vld [vmem:[%s4158_s1 + $0x28] sm:$0xff]  ;;  %156 = vst [vmem:[#allocation2 + $0x18] sm:$0xff] %v155_v3  ;;  %v161_v6 = vld [vmem:[%s4158_s1 + $0x30] sm:$0xff] }
  0x20   : > { %158 = vst [vmem:[#allocation2 + $0x20] sm:$0xff] %v157_v4  ;;  %160 = vst [vmem:[#allocation2 + $0x28] sm:$0xff] %v159_v5  ;;  %v163_v7 = vld [vmem:[%s4158_s1 + $0x38] sm:$0xff] }
  0x21   : > { %162 = vst [vmem:[#allocation2 + $0x30] sm:$0xff] %v161_v6  ;;  %164 = vst [vmem:[#allocation2 + $0x38] sm:$0xff] %v163_v7 }
  0x22   : > { %172 = vsyncadd [#allocation5], 1024 }
  0x23   : > { %3596 = dma.done.wait [#allocation5], 1024 }
  0x24   : > { %3597 = vsyncadd [#allocation5], 4294966272 }
  0x25 PF: > { %v176_v8 = vld [vmem:[%s112_s27] sm:$0xff]  ;;  %v3618_v10 = vmov 0   ;;  %v3619_v11 = vmov 2   ;;  %v178_v12 = vld [vmem:[#allocation2 + $0x8] sm:$0xff]  ;;  %v3620_v17 = vmov 0.0|0.0   ;;  %v3621_v26 = vmov 1  }
  0x26   : > { %v177_v9 = vld [vmem:[#allocation2] sm:$0xff]  ;;  %3547 = vset.pattern.permute.xlu0 %v3618_v10  ;;  %3549 = vset.pattern.permute.xlu1 %v3619_v11  ;;  %v179_v14 = vld [vmem:[#allocation2 + $0x10] sm:$0xff]  ;;  %v180_v15 = vld [vmem:[#allocation2 + $0x18] sm:$0xff]  ;;  %v201_v16 = vand.u32 4294901760, %v178_v12  ;;  %v3622_v27 = vmov 3   ;;  %vm3623_vm0 = vmmov 0  }
  0x27   : > { %v198_v13 = vand.u32 4294901760, %v177_v9  ;;  %188 = vperm.xlu0 %3547, %v176_v8   ;;  %1281 = vperm.xlu1 %3549, %v176_v8   ;;  %v204_v18 = vand.u32 4294901760, %v179_v14  ;;  %v207_v19 = vand.u32 4294901760, %v180_v15  ;;  %v181_v22 = vld [vmem:[#allocation2 + $0x20] sm:$0xff]  ;;  %v182_v23 = vld [vmem:[#allocation2 + $0x28] sm:$0xff]  ;;  %v3624_v45 = vmov 0.0  }
  0x28   : > { %3170 = vmatprep.subr.bf16.mxu0 %v3620_v17  ;;  %3242 = vmatprep.subr.bf16.mxu1 %v3620_v17  ;;  %v3734_v24 = vsub.f32 %v178_v12, %v201_v16  ;;  %v210_v30 = vand.u32 4294901760, %v181_v22  ;;  %v213_v31 = vand.u32 4294901760, %v182_v23  ;;  %v183_v33 = vld [vmem:[#allocation2 + $0x30] sm:$0xff]  ;;  %v184_v34 = vld [vmem:[#allocation2 + $0x38] sm:$0xff]  ;;  %vm193_vm1 = vcmask 523264   ;;  %s3625_s27 = smov 32  }
  0x29   : > { %v3730_v20 = vsub.f32 %v177_v9, %v198_v13  ;;  %v3732_v21 = vpack.c.bf16 %v201_v16, %v198_v13  ;;  %v3738_v29 = vpack.c.bf16 %v207_v19, %v204_v18  ;;  %v296_v36 = vsub.f32 %v179_v14, %v204_v18  ;;  %2730 = vmatprep.mubr.msk.f32.mxu0 %vm3623_vm0, %v3624_v45  ;;  %s3626_s30 = smov 64   ;;  %s3627_s3 = smov 96  }
  0x2a   : > { %v290_v28 = vand.u32 4294901760, %v3734_v24  ;;  %v303_v37 = vsub.f32 %v180_v15, %v207_v19  ;;  %v3750_v42 = vpack.c.bf16 %v213_v31, %v210_v30  ;;  %v216_v43 = vand.u32 4294901760, %v183_v33  ;;  %2844 = vmatprep.mubr.msk.f32.mxu1 %vm3623_vm0, %v3624_v45  ;;  %s2495_s4 = sshll.u32 %s3665_s13, 7  ;;  %s2404_s5 = sshll.u32 %s108_s28, 4  ;;  %s4113_s5 = int_to_ptr.vmem [resolvable:$true] %s2404_s5 }
  0x2b   : > { %v283_v25 = vand.u32 4294901760, %v3730_v20  ;;  %3548 = vset.pattern.permute.xlu0 %v3621_v26  ;;  %3550 = vset.pattern.permute.xlu1 %v3622_v27  ;;  %v297_v40 = vand.u32 4294901760, %v296_v36  ;;  %v219_v44 = vand.u32 4294901760, %v184_v34  ;;  %v310_v49 = vsub.f32 %v181_v22, %v210_v30  ;;  %s4111_s8 = scalar_lea.hbm %s4159_s2, %s2495_s4  ;;  %s2391_s13 = scalar_lea.sflag [#allocation4], %s106_s21 }
  0x2c   : > { %735 = vperm.xlu0 %3548, %v176_v8   ;;  %1827 = vperm.xlu1 %3550, %v176_v8   ;;  %v291_v35 = vsub.f32 %v3734_v24, %v290_v28  ;;  %v304_v41 = vand.u32 4294901760, %v303_v37  ;;  %v317_v50 = vsub.f32 %v182_v23, %v213_v31  ;;  %v324_v57 = vsub.f32 %v183_v33, %v216_v43  ;;  %s3552_s14 = scalar_lea.vmem %s4113_s5, 128  ;;  %s3628_s16 = smov [#allocation3]  }
  0x2d   : > { %v284_v32 = vsub.f32 %v3730_v20, %v283_v25  ;;  %3172 = vmatpush3.bf16.msra.mxu0 %v3732_v21  ;;  %3244 = vmatpush3.bf16.msra.mxu1 %v3732_v21  ;;  %v298_v47 = vsub.f32 %v296_v36, %v297_v40  ;;  %v3762_v53 = vpack.c.bf16 %v219_v44, %v216_v43  ;;  %v311_v54 = vand.u32 4294901760, %v310_v49  ;;  %p3553_p12 = scmp.ne.s32.totalorder %s4113_s5, %s3552_s14  ;;  %s3556_s17 = sshll.u32 %s3628_s16, 4  ;;  %s3557_s17 = int_to_ptr.vmem [resolvable:$false] %s3556_s17 }
  0x2e   : > { %3173 = vmatprep.subr.bf16.mxu0 %v3620_v17  ;;  %3245 = vmatprep.subr.bf16.mxu1 %v3620_v17  ;;  %v292_v39 = vand.u32 4294901760, %v291_v35  ;;  %v305_v48 = vsub.f32 %v303_v37, %v304_v41  ;;  %v318_v55 = vand.u32 4294901760, %v317_v50  ;;  %v331_v58 = vsub.f32 %v184_v34, %v219_v44  ;;  %s3558_s23 = scalar_lea.vmem %s3557_s17, 256  ;;  %p3559_p1 = scmp.lt.s32.totalorder %s4113_s5, %s3557_s17 }
  0x2f   : > { %v285_v38 = vand.u32 4294901760, %v284_v32  ;;  %v299_v51 = vand.u32 4294901760, %v298_v47  ;;  %v312_v59 = vsub.f32 %v310_v49, %v311_v54  ;;  %v325_v61 = vand.u32 4294901760, %v324_v57  ;;  %p3554_p13 = pnand %p3553_p12, %p3682_p5  ;;  %p3560_p2 = scmp.lt.s32.totalorder %s3558_s23, %s3552_s14 }
  0x30   : > { %v306_v52 = vand.u32 4294901760, %v305_v48  ;;  %3551 = vset.pattern.permute.xlu0 %v3622_v27  ;;  %v319_v60 = vsub.f32 %v317_v50, %v318_v55  ;;  %v332_v62 = vand.u32 4294901760, %v331_v58  ;;  %v3780_v7 = vpack.c.bf16 %v3734_v24, %v3730_v20 }
  0x31   : > { %3175 = vmatpush3.bf16.msra.mxu0 %v3738_v29  ;;  %3247 = vmatpush3.bf16.msra.mxu1 %v3738_v29  ;;  %v3758_v46 = vpack.c.bf16 %v292_v39, %v285_v38  ;;  %v313_v63 = vand.u32 4294901760, %v312_v59  ;;  %v326_v1 = vsub.f32 %v324_v57, %v325_v61  ;;  %v3782_v8 = vpack.c.bf16 %v303_v37, %v296_v36  ;;  %p3555_p0 = pneg %p3554_p13  ;;  %p3561_p3 = por %p3560_p2, %p3559_p1 }
  0x32   : > { %3176 = vmatprep.subr.bf16.mxu0 %v3620_v17  ;;  %3248 = vmatprep.subr.bf16.mxu1 %v3620_v17  ;;  %v3766_v56 = vpack.c.bf16 %v306_v52, %v299_v51  ;;  %v320_v0 = vand.u32 4294901760, %v319_v60  ;;  %v333_v2 = vsub.f32 %v331_v58, %v332_v62  ;;  %v3784_v9 = vpack.c.bf16 %v317_v50, %v310_v49 }
  0x33   : > { %v327_v4 = vand.u32 4294901760, %v326_v1  ;;  %v3786_v10 = vpack.c.bf16 %v331_v58, %v324_v57  ;;  %v3792_v11 = vpack.c.bf16 %v290_v28, %v283_v25  ;;  %v3794_v12 = vpack.c.bf16 %v304_v41, %v297_v40  ;;  %p3562_p4 = pnand %p3561_p3, %p3555_p0 }
  0x34   : > { %v3774_v3 = vpack.c.bf16 %v320_v0, %v313_v63  ;;  %v334_v5 = vand.u32 4294901760, %v333_v2  ;;  %v3796_v13 = vpack.c.bf16 %v318_v55, %v311_v54  ;;  %v3798_v14 = vpack.c.bf16 %v332_v62, %v325_v61 }
  0x35   : > { %3178 = vmatpush3.bf16.msra.mxu0 %v3750_v42  ;;  %3250 = vmatpush3.bf16.msra.mxu1 %v3750_v42  ;;  %v185_v15 = vlaneseq  ;;  %vm2384_vm6 = vcmask 261120   ;;  %vm2387_vm7 = vcmask 785408  }
  0x36   : > { %3179 = vmatprep.subr.bf16.mxu0 %v3620_v17  ;;  %3251 = vmatprep.subr.bf16.mxu1 %v3620_v17  ;;  %v3776_v6 = vpack.c.bf16 %v334_v5, %v327_v4 }
  0x37   : > { %v3800_v16 = vand.u32 127, %v185_v15 }
  0x39   : > { %3181 = vmatpush3.bf16.msra.mxu0 %v3762_v53  ;;  %3253 = vmatpush3.bf16.msra.mxu1 %v3762_v53 }
  0x3a   : > { %3182 = vmatprep.subr.bf16.mxu0 %v3620_v17  ;;  %3254 = vmatprep.subr.bf16.mxu1 %v3620_v17 }
  0xa6   : > { %v189_v18 = vpop.permute.xlu0 %188  ;;  %v1282_v34 = vpop.permute.xlu1 %1281 }
  0xa7   : > { %vm190_vm2 = vcmp.eq.s32.totalorder %v3800_v16, %v189_v18  ;;  %vm1283_vm4 = vcmp.eq.s32.totalorder %v3800_v16, %v1282_v34 }
  0xa8   : > { %v3804_v19 = vsel %vm190_vm2, 1.0, %v3624_v45  ;;  %v3935_v36 = vsel %vm1283_vm4, 1.0, %v3624_v45 }
  0xa9   : > { %v195_v20 = vsel %vm193_vm1, %v3804_v19, 0  ;;  %v1287_v37 = vsel %vm193_vm1, %v3935_v36, 0 }
  0xaa   : > { %v3808_v22 = vsub.f32 %v195_v20, %v195_v20  ;;  %v3950_v39 = vsub.f32 %v1287_v37, %v1287_v37 }
  0xab   : > { %v736_v23 = vpop.permute.xlu0 %735  ;;  %v1828_v35 = vpop.permute.xlu1 %1827 }
  0xac   : > { %vm737_vm3 = vcmp.eq.s32.totalorder %v3800_v16, %v736_v23  ;;  %v272_v24 = vand.u32 4294901760, %v3808_v22  ;;  %vm1829_vm5 = vcmp.eq.s32.totalorder %v3800_v16, %v1828_v35  ;;  %v1364_v41 = vand.u32 4294901760, %v3950_v39 }
  0xad   : > { %v3813_v25 = vsel %vm737_vm3, 1.0, %v3624_v45  ;;  %v3946_v38 = vsel %vm1829_vm5, 1.0, %v3624_v45 }
  0xae   : > { %v741_v26 = vsel %vm193_vm1, %v3813_v25, 0  ;;  %v273_v27 = vsub.f32 %v3808_v22, %v272_v24  ;;  %v1833_v40 = vsel %vm193_vm1, %v3946_v38, 0  ;;  %v1365_v44 = vsub.f32 %v3950_v39, %v1364_v41 }
  0xaf   : > { %v3820_v28 = vsub.f32 %v741_v26, %v741_v26  ;;  %v3964_v43 = vsub.f32 %v1833_v40, %v1833_v40 }
  0xb0   : > { %v274_v30 = vand.u32 4294901760, %v273_v27  ;;  %v1366_v48 = vand.u32 4294901760, %v1365_v44 }
  0xb1   : > { %v818_v31 = vand.u32 4294901760, %v3820_v28  ;;  %v1910_v47 = vand.u32 4294901760, %v3964_v43 }
  0xb2   : > { %2731 = vmatmul.mubr.f32.vlgmr.msra.gmra.mrb[0].mxu0 %v274_v30 }
  0xb3   : > { %3184 = vmatpush3.bf16.msra.mxu0 %v3758_v46  ;;  %v819_v32 = vsub.f32 %v3820_v28, %v818_v31  ;;  %2749 = vmatprep.mubr.msk.f32.mxu0 %vm3623_vm0, %v3624_v45  ;;  %v1911_v49 = vsub.f32 %v3964_v43, %v1910_v47 }
  0xb4   : > { %3185 = vmatprep.subr.bf16.mxu0 %v3620_v17 }
  0xb5   : > { %v820_v33 = vand.u32 4294901760, %v819_v32  ;;  %v1912_v50 = vand.u32 4294901760, %v1911_v49 }
  0xb7   : > { %3187 = vmatpush3.bf16.msra.mxu0 %v3766_v56  ;;  %2845 = vmatmul.mubr.f32.vlgmr.msra.gmra.mrb[0].mxu1 %v820_v33 }
  0xb8   : > { %3256 = vmatpush3.bf16.msra.mxu1 %v3758_v46  ;;  %3188 = vmatprep.subr.bf16.mxu0 %v3620_v17 }
  0xb9   : > { %3257 = vmatprep.subr.bf16.mxu1 %v3620_v17  ;;  %2863 = vmatprep.mubr.msk.f32.mxu1 %vm3623_vm0, %v3624_v45 }
  0xbb   : > { %3190 = vmatpush3.bf16.msra.mxu0 %v3774_v3 }
  0xbc   : > { %3259 = vmatpush3.bf16.msra.mxu1 %v3766_v56  ;;  %3191 = vmatprep.subr.bf16.mxu0 %v3620_v17 }
  0xbd   : > { %3260 = vmatprep.subr.bf16.mxu1 %v3620_v17 }
  0xbf   : > { %3193 = vmatpush3.bf16.msra.mxu0 %v3776_v6 }
  0xc0   : > { %3262 = vmatpush3.bf16.msra.mxu1 %v3774_v3  ;;  %3194 = vmatprep.subr.bf16.mxu0 %v3620_v17 }
  0xc1   : > { %3263 = vmatprep.subr.bf16.mxu1 %v3620_v17 }
  0xc2   : > { %2750 = vmatmul.mubr.msk.f32.vlgmr.msra.gmra.mrb[0].mxu0 %vm193_vm1, %v3804_v19 }
  0xc3   : > { %3196 = vmatpush3.bf16.msra.mxu0 %v3780_v7  ;;  %2768 = vmatprep.mubr.msk.f32.mxu0 %vm3623_vm0, %v3624_v45 }
  0xc4   : > { %3265 = vmatpush3.bf16.msra.mxu1 %v3776_v6  ;;  %3197 = vmatprep.subr.bf16.mxu0 %v3620_v17 }
  0xc5   : > { %3266 = vmatprep.subr.bf16.mxu1 %v3620_v17 }
  0xc7   : > { %3199 = vmatpush3.bf16.msra.mxu0 %v3782_v8  ;;  %2864 = vmatmul.mubr.msk.f32.vlgmr.msra.gmra.mrb[0].mxu1 %vm193_vm1, %v3813_v25 }
  0xc8   : > { %3268 = vmatpush3.bf16.msra.mxu1 %v3780_v7  ;;  %3200 = vmatprep.subr.bf16.mxu0 %v3620_v17 }
  0xc9   : > { %3269 = vmatprep.subr.bf16.mxu1 %v3620_v17  ;;  %2882 = vmatprep.mubr.msk.f32.mxu1 %vm3623_vm0, %v3624_v45 }
  0xcb   : > { %3202 = vmatpush3.bf16.msra.mxu0 %v3784_v9 }
  0xcc   : > { %3271 = vmatpush3.bf16.msra.mxu1 %v3782_v8  ;;  %3203 = vmatprep.subr.bf16.mxu0 %v3620_v17 }
  0xcd   : > { %3272 = vmatprep.subr.bf16.mxu1 %v3620_v17 }
  0xcf   : > { %3205 = vmatpush3.bf16.msra.mxu0 %v3786_v10 }
  0xd0   : > { %3274 = vmatpush3.bf16.msra.mxu1 %v3784_v9  ;;  %3206 = vmatprep.subr.bf16.mxu0 %v3620_v17 }
  0xd1   : > { %3275 = vmatprep.subr.bf16.mxu1 %v3620_v17 }
  0xd2   : > { %2769 = vmatmul.mubr.f32.vlgmr.msra.gmra.mrb[0].mxu0 %v3808_v22 }
  0xd3   : > { %3208 = vmatpush3.bf16.msra.mxu0 %v3732_v21  ;;  %2787 = vmatprep.mubr.msk.f32.mxu0 %vm3623_vm0, %v3624_v45 }
  0xd4   : > { %3277 = vmatpush3.bf16.msra.mxu1 %v3786_v10  ;;  %3209 = vmatprep.subr.bf16.mxu0 %v3620_v17 }
  0xd5   : > { %3278 = vmatprep.subr.bf16.mxu1 %v3620_v17 }
  0xd7   : > { %3211 = vmatpush3.bf16.msra.mxu0 %v3738_v29  ;;  %2883 = vmatmul.mubr.f32.vlgmr.msra.gmra.mrb[0].mxu1 %v3820_v28 }
  0xd8   : > { %3280 = vmatpush3.bf16.msra.mxu1 %v3732_v21  ;;  %3212 = vmatprep.subr.bf16.mxu0 %v3620_v17 }
  0xd9   : > { %3281 = vmatprep.subr.bf16.mxu1 %v3620_v17  ;;  %2901 = vmatprep.mubr.msk.f32.mxu1 %vm3623_vm0, %v3624_v45 }
  0xdb   : > { %3214 = vmatpush3.bf16.msra.mxu0 %v3750_v42 }
  0xdc   : > { %3283 = vmatpush3.bf16.msra.mxu1 %v3738_v29  ;;  %3215 = vmatprep.subr.bf16.mxu0 %v3620_v17 }
  0xdd   : > { %3284 = vmatprep.subr.bf16.mxu1 %v3620_v17 }
  0xdf   : > { %3217 = vmatpush3.bf16.msra.mxu0 %v3762_v53 }
  0xe0   : > { %3286 = vmatpush3.bf16.msra.mxu1 %v3750_v42  ;;  %3218 = vmatprep.subr.bf16.mxu0 %v3620_v17 }
  0xe1   : > { %3287 = vmatprep.subr.bf16.mxu1 %v3620_v17 }
  0xe2   : > { %2788 = vmatmul.mubr.f32.vlgmr.msra.gmra.mrb[0].mxu0 %v272_v24 }
  0xe3   : > { %3220 = vmatpush3.bf16.msra.mxu0 %v3792_v11  ;;  %2806 = vmatprep.mubr.msk.f32.mxu0 %vm3623_vm0, %v3624_v45 }
  0xe4   : > { %3289 = vmatpush3.bf16.msra.mxu1 %v3762_v53  ;;  %3221 = vmatprep.subr.bf16.mxu0 %v3620_v17 }
  0xe5   : > { %3290 = vmatprep.subr.bf16.mxu1 %v3620_v17 }
  0xe7   : > { %3223 = vmatpush3.bf16.msra.mxu0 %v3794_v12  ;;  %2902 = vmatmul.mubr.f32.vlgmr.msra.gmra.mrb[0].mxu1 %v818_v31 }
  0xe8   : > { %3292 = vmatpush3.bf16.msra.mxu1 %v3792_v11  ;;  %3224 = vmatprep.subr.bf16.mxu0 %v3620_v17 }
  0xe9   : > { %3293 = vmatprep.subr.bf16.mxu1 %v3620_v17  ;;  %2920 = vmatprep.mubr.msk.f32.mxu1 %vm3623_vm0, %v3624_v45 }
  0xeb   : > { %3226 = vmatpush3.bf16.msra.mxu0 %v3796_v13 }
  0xec   : > { %3295 = vmatpush3.bf16.msra.mxu1 %v3794_v12  ;;  %3227 = vmatprep.subr.bf16.mxu0 %v3620_v17 }
  0xed   : > { %3296 = vmatprep.subr.bf16.mxu1 %v3620_v17 }
  0xef   : > { %3229 = vmatpush3.bf16.msra.mxu0 %v3798_v14 }
  0xf0   : > { %3298 = vmatpush3.bf16.msra.mxu1 %v3796_v13  ;;  %3230 = vmatprep.subr.bf16.mxu0 %v3620_v17 }
  0xf1   : > { %3299 = vmatprep.subr.bf16.mxu1 %v3620_v17 }
  0xf2   : > { %2807 = vmatmul.mubr.msk.f32.vlgmr.msra.gmra.mrb[0].mxu0 %vm193_vm1, %v3804_v19 }
  0xf3   : > { %3232 = vmatpush3.bf16.msra.mxu0 %v3732_v21  ;;  %2825 = vmatprep.mubr.msk.f32.mxu0 %vm3623_vm0, %v3624_v45 }
  0xf4   : > { %3301 = vmatpush3.bf16.msra.mxu1 %v3798_v14  ;;  %3233 = vmatprep.subr.bf16.mxu0 %v3620_v17 }
  0xf5   : > { %3302 = vmatprep.subr.bf16.mxu1 %v3620_v17 }
  0xf7   : > { %3235 = vmatpush3.bf16.msra.mxu0 %v3738_v29  ;;  %2921 = vmatmul.mubr.msk.f32.vlgmr.msra.gmra.mrb[0].mxu1 %vm193_vm1, %v3813_v25 }
  0xf8   : > { %3304 = vmatpush3.bf16.msra.mxu1 %v3732_v21  ;;  %3236 = vmatprep.subr.bf16.mxu0 %v3620_v17 }
  0xf9   : > { %3305 = vmatprep.subr.bf16.mxu1 %v3620_v17  ;;  %2939 = vmatprep.mubr.msk.f32.mxu1 %vm3623_vm0, %v3624_v45 }
  0xfb   : > { %3238 = vmatpush3.bf16.msra.mxu0 %v3750_v42 }
  0xfc   : > { %3307 = vmatpush3.bf16.msra.mxu1 %v3738_v29  ;;  %3239 = vmatprep.subr.bf16.mxu0 %v3620_v17 }
  0xfd   : > { %3308 = vmatprep.subr.bf16.mxu1 %v3620_v17 }
  0xff   : > { %3241 = vmatpush3.bf16.msra.mxu0 %v3762_v53 }
 0x100   : > { %3310 = vmatpush3.bf16.msra.mxu1 %v3750_v42  ;;  %3314 = vmatprep.subr.bf16.mxu0 %v3620_v17 }
 0x101   : > { %3311 = vmatprep.subr.bf16.mxu1 %v3620_v17 }
 0x102   : > { %2826 = vmatmul.mubr.msk.f32.vlgmr.msra.gmra.mrb[0].mxu0 %vm193_vm1, %v3804_v19 }
 0x103   : > { %3316 = vmatpush3.bf16.msra.mxu0 %v3732_v21  ;;  %2958 = vmatprep.mubr.msk.f32.mxu0 %vm3623_vm0, %v3624_v45 }
 0x104   : > { %3313 = vmatpush3.bf16.msra.mxu1 %v3762_v53  ;;  %3317 = vmatprep.subr.bf16.mxu0 %v3620_v17 }
 0x105   : > { %3386 = vmatprep.subr.bf16.mxu1 %v3620_v17 }
 0x107   : > { %2940 = vmatmul.mubr.msk.f32.vlgmr.msra.gmra.mrb[0].mxu1 %vm193_vm1, %v3813_v25  ;;  %3319 = vmatpush3.bf16.msra.mxu0 %v3738_v29 }
 0x108   : > { %3388 = vmatpush3.bf16.msra.mxu1 %v3732_v21  ;;  %3320 = vmatprep.subr.bf16.mxu0 %v3620_v17 }
 0x109   : > { %3389 = vmatprep.subr.bf16.mxu1 %v3620_v17  ;;  %3072 = vmatprep.mubr.msk.f32.mxu1 %vm3623_vm0, %v3624_v45 }
 0x10b   : > { %3322 = vmatpush3.bf16.msra.mxu0 %v3750_v42 }
 0x10c   : > { %3391 = vmatpush3.bf16.msra.mxu1 %v3738_v29  ;;  %3323 = vmatprep.subr.bf16.mxu0 %v3620_v17 }
 0x10d   : > { %3392 = vmatprep.subr.bf16.mxu1 %v3620_v17 }
 0x10f   : > { %3325 = vmatpush3.bf16.msra.mxu0 %v3762_v53 }
 0x110   : > { %3394 = vmatpush3.bf16.msra.mxu1 %v3750_v42  ;;  %3326 = vmatprep.subr.bf16.mxu0 %v3620_v17 }
 0x111   : > { %3395 = vmatprep.subr.bf16.mxu1 %v3620_v17 }
 0x112   : > { %2959 = vmatmul.mubr.f32.vlgmr.msra.gmra.mrb[2].mxu0 %v1366_v48 }
 0x113   : > { %3328 = vmatpush3.bf16.msra.mxu0 %v3758_v46  ;;  %2977 = vmatprep.mubr.msk.f32.mxu0 %vm3623_vm0, %v3624_v45 }
 0x114   : > { %3397 = vmatpush3.bf16.msra.mxu1 %v3762_v53  ;;  %3329 = vmatprep.subr.bf16.mxu0 %v3620_v17 }
 0x115   : > { %3398 = vmatprep.subr.bf16.mxu1 %v3620_v17 }
 0x117   : > { %3331 = vmatpush3.bf16.msra.mxu0 %v3766_v56  ;;  %3073 = vmatmul.mubr.f32.vlgmr.msra.gmra.mrb[2].mxu1 %v1912_v50 }
 0x118   : > { %3400 = vmatpush3.bf16.msra.mxu1 %v3758_v46  ;;  %3332 = vmatprep.subr.bf16.mxu0 %v3620_v17 }
 0x119   : > { %3401 = vmatprep.subr.bf16.mxu1 %v3620_v17  ;;  %3091 = vmatprep.mubr.msk.f32.mxu1 %vm3623_vm0, %v3624_v45 }
 0x11b   : > { %3334 = vmatpush3.bf16.msra.mxu0 %v3774_v3 }
 0x11c   : > { %3403 = vmatpush3.bf16.msra.mxu1 %v3766_v56  ;;  %3335 = vmatprep.subr.bf16.mxu0 %v3620_v17 }
 0x11d   : > { %3404 = vmatprep.subr.bf16.mxu1 %v3620_v17 }
 0x11f   : > { %3337 = vmatpush3.bf16.msra.mxu0 %v3776_v6 }
 0x120   : > { %3406 = vmatpush3.bf16.msra.mxu1 %v3774_v3  ;;  %3338 = vmatprep.subr.bf16.mxu0 %v3620_v17 }
 0x121   : > { %3407 = vmatprep.subr.bf16.mxu1 %v3620_v17 }
 0x122   : > { %2978 = vmatmul.mubr.msk.f32.vlgmr.msra.gmra.mrb[2].mxu0 %vm193_vm1, %v3935_v36 }
 0x123   : > { %3340 = vmatpush3.bf16.msra.mxu0 %v3780_v7  ;;  %2996 = vmatprep.mubr.msk.f32.mxu0 %vm3623_vm0, %v3624_v45 }
 0x124   : > { %3409 = vmatpush3.bf16.msra.mxu1 %v3776_v6  ;;  %3341 = vmatprep.subr.bf16.mxu0 %v3620_v17 }
 0x125   : > { %3410 = vmatprep.subr.bf16.mxu1 %v3620_v17 }
 0x127   : > { %3343 = vmatpush3.bf16.msra.mxu0 %v3782_v8  ;;  %3092 = vmatmul.mubr.msk.f32.vlgmr.msra.gmra.mrb[2].mxu1 %vm193_vm1, %v3946_v38 }
 0x128   : > { %3412 = vmatpush3.bf16.msra.mxu1 %v3780_v7  ;;  %3344 = vmatprep.subr.bf16.mxu0 %v3620_v17 }
 0x129   : > { %3413 = vmatprep.subr.bf16.mxu1 %v3620_v17  ;;  %3110 = vmatprep.mubr.msk.f32.mxu1 %vm3623_vm0, %v3624_v45 }
 0x12b   : > { %3346 = vmatpush3.bf16.msra.mxu0 %v3784_v9 }
 0x12c   : > { %3415 = vmatpush3.bf16.msra.mxu1 %v3782_v8  ;;  %3347 = vmatprep.subr.bf16.mxu0 %v3620_v17 }
 0x12d   : > { %3416 = vmatprep.subr.bf16.mxu1 %v3620_v17 }
 0x12f   : > { %3349 = vmatpush3.bf16.msra.mxu0 %v3786_v10 }
 0x130   : > { %3418 = vmatpush3.bf16.msra.mxu1 %v3784_v9  ;;  %3350 = vmatprep.subr.bf16.mxu0 %v3620_v17 }
 0x131   : > { %3419 = vmatprep.subr.bf16.mxu1 %v3620_v17 }
 0x132   : > { %2997 = vmatmul.mubr.f32.vlgmr.msra.gmra.mrb[2].mxu0 %v3950_v39 }
 0x133   : > { %3352 = vmatpush3.bf16.msra.mxu0 %v3732_v21  ;;  %3015 = vmatprep.mubr.msk.f32.mxu0 %vm3623_vm0, %v3624_v45 }
 0x134   : > { %3421 = vmatpush3.bf16.msra.mxu1 %v3786_v10  ;;  %3353 = vmatprep.subr.bf16.mxu0 %v3620_v17 }
 0x135   : > { %3422 = vmatprep.subr.bf16.mxu1 %v3620_v17 }
 0x137   : > { %3355 = vmatpush3.bf16.msra.mxu0 %v3738_v29  ;;  %3111 = vmatmul.mubr.f32.vlgmr.msra.gmra.mrb[2].mxu1 %v3964_v43 }
 0x138   : > { %3424 = vmatpush3.bf16.msra.mxu1 %v3732_v21  ;;  %3356 = vmatprep.subr.bf16.mxu0 %v3620_v17 }
 0x139   : > { %3425 = vmatprep.subr.bf16.mxu1 %v3620_v17  ;;  %3129 = vmatprep.mubr.msk.f32.mxu1 %vm3623_vm0, %v3624_v45 }
 0x13b   : > { %3358 = vmatpush3.bf16.msra.mxu0 %v3750_v42 }
 0x13c   : > { %3427 = vmatpush3.bf16.msra.mxu1 %v3738_v29  ;;  %3359 = vmatprep.subr.bf16.mxu0 %v3620_v17 }
 0x13d   : > { %3428 = vmatprep.subr.bf16.mxu1 %v3620_v17 }
 0x13f   : > { %3361 = vmatpush3.bf16.msra.mxu0 %v3762_v53 }
 0x140   : > { %3430 = vmatpush3.bf16.msra.mxu1 %v3750_v42  ;;  %3362 = vmatprep.subr.bf16.mxu0 %v3620_v17 }
 0x141   : > { %3431 = vmatprep.subr.bf16.mxu1 %v3620_v17 }
 0x142   : > { %3016 = vmatmul.mubr.f32.vlgmr.msra.gmra.mrb[2].mxu0 %v1364_v41 }
 0x143   : > { %3364 = vmatpush3.bf16.msra.mxu0 %v3792_v11  ;;  %3034 = vmatprep.mubr.msk.f32.mxu0 %vm3623_vm0, %v3624_v45 }
 0x144   : > { %3433 = vmatpush3.bf16.msra.mxu1 %v3762_v53  ;;  %3365 = vmatprep.subr.bf16.mxu0 %v3620_v17 }
 0x145   : > { %3434 = vmatprep.subr.bf16.mxu1 %v3620_v17 }
 0x147   : > { %3367 = vmatpush3.bf16.msra.mxu0 %v3794_v12  ;;  %3130 = vmatmul.mubr.f32.vlgmr.msra.gmra.mrb[2].mxu1 %v1910_v47 }
 0x148   : > { %3436 = vmatpush3.bf16.msra.mxu1 %v3792_v11  ;;  %3368 = vmatprep.subr.bf16.mxu0 %v3620_v17 }
 0x149   : > { %3437 = vmatprep.subr.bf16.mxu1 %v3620_v17  ;;  %3148 = vmatprep.mubr.msk.f32.mxu1 %vm3623_vm0, %v3624_v45 }
 0x14b   : > { %3370 = vmatpush3.bf16.msra.mxu0 %v3796_v13 }
 0x14c   : > { %3439 = vmatpush3.bf16.msra.mxu1 %v3794_v12  ;;  %3371 = vmatprep.subr.bf16.mxu0 %v3620_v17 }
 0x14d   : > { %3440 = vmatprep.subr.bf16.mxu1 %v3620_v17 }
 0x14f   : > { %3373 = vmatpush3.bf16.msra.mxu0 %v3798_v14 }
 0x150   : > { %3442 = vmatpush3.bf16.msra.mxu1 %v3796_v13  ;;  %3374 = vmatprep.subr.bf16.mxu0 %v3620_v17 }
 0x151   : > { %3443 = vmatprep.subr.bf16.mxu1 %v3620_v17 }
 0x152   : > { %3035 = vmatmul.mubr.msk.f32.vlgmr.msra.gmra.mrb[2].mxu0 %vm193_vm1, %v3935_v36 }
 0x153   : > { %3376 = vmatpush3.bf16.msra.mxu0 %v3732_v21  ;;  %3053 = vmatprep.mubr.msk.f32.mxu0 %vm3623_vm0, %v3624_v45 }
 0x154   : > { %3445 = vmatpush3.bf16.msra.mxu1 %v3798_v14  ;;  %3377 = vmatprep.subr.bf16.mxu0 %v3620_v17 }
 0x155   : > { %3446 = vmatprep.subr.bf16.mxu1 %v3620_v17 }
 0x157   : > { %3379 = vmatpush3.bf16.msra.mxu0 %v3738_v29  ;;  %3149 = vmatmul.mubr.msk.f32.vlgmr.msra.gmra.mrb[2].mxu1 %vm193_vm1, %v3946_v38 }
 0x158   : > { %3448 = vmatpush3.bf16.msra.mxu1 %v3732_v21  ;;  %3380 = vmatprep.subr.bf16.mxu0 %v3620_v17 }
 0x159   : > { %3449 = vmatprep.subr.bf16.mxu1 %v3620_v17  ;;  %3167 = vmatprep.mubr.msk.f32.mxu1 %vm3623_vm0, %v3624_v45 }
 0x15b   : > { %3382 = vmatpush3.bf16.msra.mxu0 %v3750_v42 }
 0x15c   : > { %3451 = vmatpush3.bf16.msra.mxu1 %v3738_v29  ;;  %3383 = vmatprep.subr.bf16.mxu0 %v3620_v17 }
 0x15d   : > { %3452 = vmatprep.subr.bf16.mxu1 %v3620_v17 }
 0x15f   : > { %3385 = vmatpush3.bf16.msra.mxu0 %v3762_v53 }
 0x160   : > { %3454 = vmatpush3.bf16.msra.mxu1 %v3750_v42 }
 0x161   : > { %3455 = vmatprep.subr.bf16.mxu1 %v3620_v17 }
 0x162   : > { %3054 = vmatmul.mubr.msk.f32.vlgmr.msra.gmra.mrb[2].mxu0 %vm193_vm1, %v3935_v36 }
 0x164   : > { %3457 = vmatpush3.bf16.msra.mxu1 %v3762_v53 }
 0x167   : > { %3168 = vmatmul.mubr.msk.f32.vlgmr.msra.gmra.mrb[2].mxu1 %vm193_vm1, %v3946_v38 }
 0x1d5   : > { %v730_v21 = vpop.f32.mrb[0].mxu0 }
 0x1d6   : > { %v2827_v29 = vpop.f32.mrb[1].mxu0 }
 0x1da   : > { %v1276_v45 = vpop.f32.mrb[0].mxu1 }
 0x1db   : > { %2373 = vrot.lane.b32.xlu1 %v1276_v45, %s3625_s27  ;;  %v2941_v46 = vpop.f32.mrb[1].mxu1 }
 0x235   : > { %v1822_v51 = vpop.f32.mrb[2].mxu0 }
 0x236   : > { %2377 = vrot.lane.b32.xlu0 %v1822_v51, %s3626_s30  ;;  %v3055_v17 = vpop.f32.mrb[3].mxu0 }
 0x23a   : > { %v2368_v42 = vpop.f32.mrb[2].mxu1 }
 0x23b   : > { %2381 = vrot.lane.b32.xlu1 %v2368_v42, %s3627_s3  ;;  %v3169_v52 = vpop.f32.mrb[3].mxu1 }
 0x24d   : > { %v2374_v53 = vpop.permute.xlu1 %2373 }
 0x24e   : > { %v2385_v55 = vsel %vm2384_vm6, %v730_v21, %v2374_v53 }
 0x2a8   : > { %v2378_v54 = vpop.permute.xlu0 %2377 }
 0x2a9   : > { %v2386_v56 = vsel %vm193_vm1, %v2385_v55, %v2378_v54 }
 0x2ad   : > { %v2382_v57 = vpop.permute.xlu1 %2381 }
 0x2ae   : > { %v2388_v58 = vsel %vm2387_vm7, %v2386_v56, %v2382_v57 }
 0x2af   : > { %2389 = vst [vmem:[%s108_s28] sm:$0xff] %v2388_v58 }
 0x2b0   : > { %3565 = shalt.err (!%p3562_p4)
}
 0x2b1   : > { %s3566_s21 = scalar_lea.hbm %s4111_s8, 128  ;;  %s3570_s24 = scalar_lea.hbm %s4159_s2, 512 }
 0x2b2   : > { %p3567_p7 = scmp.ne.s32.totalorder %s4111_s8, %s3566_s21  ;;  %p3571_p10 = scmp.lt.u32.totalorder %s4111_s8, %s4159_s2 }
 0x2b3   : > { %p3572_p11 = scmp.lt.u32.totalorder %s3570_s24, %s3566_s21  ;;  %p3574_p13 = scmp.lt.u32.totalorder %s3566_s21, %s4111_s8 }
 0x2b4   : > { %p3568_p8 = pnand %p3567_p7, %p3682_p5 }
 0x2b5   : > { %p3573_p12 = por %p3572_p11, %p3571_p10 }
 0x2b6   : > { %p3569_p9 = pneg %p3568_p8 }
 0x2b7   : > { %p3575_p0 = por %p3574_p13, %p3573_p12 }
 0x2b9   : > { %p3576_p1 = pnand %p3575_p0, %p3569_p9 }
 0x2bb   : > { %3579 = shalt.err (!%p3576_p1)
}
 0x2bc   : > { %3498 = dma.vmem_to_hbm [thread:$0]  (%p3682_p5), %s4113_s5, 128, %s4111_s8, %s2391_s13  }
 0x2bd PF: > { %p3504_p2 = scmp.ge.s32.totalorder %s3616_s12, 2  ;;  %s2416_s29 = sand.u32 1, %s3604_s9  }
 0x2be   : > { %s2417_s27 = scalar_lea.sflag [#allocation4], %s2416_s29 }
 0x2bf   : > { %p3501_p3 = pnand %p3504_p2, %p3686_p6 }
 0x2c1   : > { %3599 = dma.done.wait (!%p3501_p3), %s2417_s27, 128  }
 0x2c2   : > { %3601 = vsyncadd (!%p3501_p3), %s2417_s27, 4294967168  ;;  %p12_p4 = scmp.ge.s32.totalorder %s3669_s15, 6   ;;  %s4162_s9 = smov %s3608_s10 }
 0x2c3   : > { %s4163_s10 = smov %s3612_s11  ;;  %s4164_s11 = smov %s3680_s18 }
 0x2c4   : > { %s4165_s12 = smov %s3669_s15  ;;  %14 = sbr.rel (!%p12_p4) target bundleno = 3 (0x3), region = 106 }
 0x2cb   :  { %2422 = vsyncpa [#allocation4], 1 }
 0x2cc   :  { %2424 = vsyncpa [#allocation4 + $0x1], 1 }

</bundles_post_ra>
